<compile_context>
chip_gen: v7x
topology: tpu7x:2x2x1
jax: 0.10.0
libtpu: 0.0.40
codegen_flags: <defaults>
</compile_context>

<pallas_src>
import numpy as np
import jax
import jax.numpy as jnp
from jax.experimental import pallas as pl
from jax.experimental.pallas import tpu as pltpu


def _rebind_kernel(x_ref, fwd_ref, invc_ref, invs_ref, o_ref):
    """One folded row tile.

    x_ref   : (tn, W)    W = k*D, lane-dense (multiple of 128)
    fwd_ref : (W, 6*W)   blockdiag([C | -S | Wa^T C | -Wa^T S | Wb^T C | -Wb^T S])
    invc_ref: (W, W)     blockdiag(C) / D
    invs_ref: (W, W)     blockdiag(-S) / D
    o_ref   : (tn, W)
    """
    W = x_ref.shape[-1]
    cdt = fwd_ref.dtype                       # MXU operand dtype (bf16 or f32)
    x = x_ref[...].astype(cdt)

    # Single wide MXU push -> [xr | xi | ar | ai | br | bi], each chunk (tn, W).
    t = jnp.dot(x, fwd_ref[...], preferred_element_type=jnp.float32)
    xr = t[:, 0 * W:1 * W]
    xi = t[:, 1 * W:2 * W]
    ar = t[:, 2 * W:3 * W]
    ai = t[:, 3 * W:4 * W]
    br = t[:, 4 * W:5 * W]
    bi = t[:, 5 * W:6 * W]

    # Z = DFT(x) * conj(DFT(a)) * DFT(b)   (elementwise, VPU, f32)
    wr = xr * ar + xi * ai
    wi = xi * ar - xr * ai
    zr = wr * br - wi * bi
    zi = wr * bi + wi * br

    # real(IDFT(Z)) as two accumulated 128-deep dots (1/D folded into constants,
    # no lane-dim concat copy).
    y = jnp.dot(zr.astype(cdt), invc_ref[...], preferred_element_type=jnp.float32)
    y = y + jnp.dot(zi.astype(cdt), invs_ref[...], preferred_element_type=jnp.float32)
    o_ref[...] = y.astype(o_ref.dtype)


def _round_up(n, m):
    return ((n + m - 1) // m) * m


def rebind_forward(x, wa, wb, *, tile_rows=2048, fold=None, use_bf16=True):
    """x: (B, T, D) float32; wa, wb: (D, D) PyTorch-style Linear weights (out, in).

    tile_rows: max folded rows per grid step (each folded row = `fold` rows of x).
    fold:      rows folded per wide row; default makes k*D a multiple of 128.
    use_bf16:  bf16 MXU operands with f32 accumulation (default; ~1e-2 rel-RMS).
               Pass False for the strict f32 path (2e-3 tolerance).
    """
    B, T, D = x.shape
    N = B * T

    # --- widen D to the lane width via row folding + block-diagonal constants ---
    k = int(fold) if fold is not None else int(np.lcm(D, 128) // D)
    W = k * D
    assert W % 128 == 0, "folded width must be lane-dense"

    # Constant DFT matrices (built once in fp64, cast down).
    # TODO(synk): optional v5e-only win: exploit real-input DFT conjugate
    # symmetry (only D/2+1 independent bins) to roughly halve the fwd columns;
    # needs Nyquist-bin handling folded into invc/invs.
    j = np.arange(D)
    ang = 2.0 * np.pi * np.outer(j, j) / D
    C = jnp.asarray(np.cos(ang), dtype=jnp.float32)
    S = jnp.asarray(np.sin(ang), dtype=jnp.float32)

    wa_t = wa.T.astype(jnp.float32)           # torch Linear computes x @ W^T
    wb_t = wb.T.astype(jnp.float32)
    # Fold the linear layers into the DFT: DFT(x @ W^T) = x @ (W^T @ DFT).
    wac, was = wa_t @ C, wa_t @ S
    wbc, wbs = wb_t @ C, wb_t @ S

    eye = jnp.eye(k, dtype=jnp.float32)
    bd = lambda m: jnp.kron(eye, m)           # (D,P) -> (k*D, k*P) block diagonal
    fwd = jnp.concatenate(
        [bd(C), bd(-S), bd(wac), bd(-was), bd(wbc), bd(-wbs)], axis=1)  # (W, 6W)
    invc = bd(C) * (1.0 / D)                                            # (W, W)
    invs = bd(-S) * (1.0 / D)                                           # (W, W)
    cdt = jnp.bfloat16 if use_bf16 else jnp.float32
    fwd, invc, invs = fwd.astype(cdt), invc.astype(cdt), invs.astype(cdt)

    # --- fold rows: pad only to a multiple of k (<= k-1 rows). Ragged folded
    #     row counts are handled by Pallas partial blocks, so there is no
    #     full-tile pad copy of x in the wrapper. ---
    xf = x.reshape(N, D)
    rem = N % k
    if rem:
        # TODO(synk): for huge misaligned N, allow_input_fusion could fuse this
        # pad into the pallas_call operand instead of materializing a copy.
        xf = jnp.pad(xf, ((0, k - rem), (0, 0)))
    nf = xf.shape[0] // k
    xw = xf.reshape(nf, W)                    # row-major fold: zero-cost reshape

    # --- tile selection --------------------------------------------------------
    # Big tiles amortize the ~0.35us/step fixed overhead; cap so the "parallel"
    # grid keeps >=2 (ideally 4) steps when there is enough work, since v7x
    # shards this axis across its 2 TensorCores.
    nf8 = _round_up(nf, 8)
    cap = _round_up(min(max(int(tile_rows), 8), nf8), 8)
    min_tile = 256
    if nf8 > min_tile:
        cap = min(cap, max(_round_up(pl.cdiv(nf8, 4), 8), min_tile))
    if nf <= cap:
        tile = nf                             # single exact block (== array dim)
    else:
        tile = cap                            # multiple of 8; last block partial
    grid = pl.cdiv(nf, tile)

    cbytes = 2 if use_bf16 else 4
    # Rough per-step VMEM upper bound: in/out double buffers + (tile, 6W) f32
    # intermediate + elementwise temporaries + resident constants.
    vmem_need = tile * W * 4 * 16 + 8 * W * W * cbytes * 2
    vmem_limit = int(min(max(vmem_need, 32 << 20), 48 << 20))

    # Real (non-zero-MAC) work: 8*D^2 MACs per original row.
    cost = pl.CostEstimate(
        flops=16 * N * D * D,
        transcendentals=0,
        bytes_accessed=2 * N * D * 4 + 8 * W * W * cbytes)

    out = pl.pallas_call(
        _rebind_kernel,
        out_shape=jax.ShapeDtypeStruct((nf, W), x.dtype),
        grid=(grid,),
        in_specs=[
            pl.BlockSpec((tile, W), lambda i: (i, 0)),       # folded x rows
            pl.BlockSpec((W, 6 * W), lambda i: (0, 0)),      # fused fwd constants
            pl.BlockSpec((W, W), lambda i: (0, 0)),          # IDFT real constants
            pl.BlockSpec((W, W), lambda i: (0, 0)),          # IDFT imag constants
        ],
        out_specs=pl.BlockSpec((tile, W), lambda i: (i, 0)),
        compiler_params=pltpu.CompilerParams(
            dimension_semantics=("parallel",),
            vmem_limit_bytes=vmem_limit),
        cost_estimate=cost,
    )(xw, fwd, invc, invs)

    return out.reshape(nf * k, D)[:N].reshape(B, T, D)


def rebind_reference(x, wa, wb):
    """Pure-JAX reference using complex FFT (same HRR convention)."""
    a = jnp.einsum("btd,ed->bte", x, wa)
    b = jnp.einsum("btd,ed->bte", x, wb)
    fx = jnp.fft.fft(x, axis=-1)
    fa = jnp.fft.fft(a, axis=-1)
    fb = jnp.fft.fft(b, axis=-1)
    return jnp.real(jnp.fft.ifft(fx * jnp.conj(fa) * fb, axis=-1)).astype(x.dtype)


def _rel_rms(a, b):
    a = np.asarray(a, np.float64)
    b = np.asarray(b, np.float64)
    return float(np.sqrt(np.mean((a - b) ** 2)) / np.sqrt(np.mean(b ** 2)))


if __name__ == "__main__":
    key = jax.random.PRNGKey(0)
    kx, ka, kb, kx2, kx3 = jax.random.split(key, 5)

    # Small shape consistent with the module (batch=2, seq=8, model_dims=32).
    B, T, D = 2, 8, 32
    x = jax.random.normal(kx, (B, T, D), dtype=jnp.float32)
    wa = jax.random.normal(ka, (D, D), dtype=jnp.float32) / np.sqrt(D)
    wb = jax.random.normal(kb, (D, D), dtype=jnp.float32) / np.sqrt(D)

    ref = jax.block_until_ready(rebind_reference(x, wa, wb))

    # Strict f32-operand path: tight tolerance.
    out_f32 = jax.block_until_ready(rebind_forward(x, wa, wb, use_bf16=False))
    assert out_f32.shape == (B, T, D)
    np.testing.assert_allclose(np.asarray(out_f32), np.asarray(ref),
                               rtol=2e-3, atol=2e-3)

    # Default bf16-operand fast path (f32 accumulation): scale-normalized RMS.
    out_bf16 = jax.block_until_ready(rebind_forward(x, wa, wb))
    assert _rel_rms(out_bf16, ref) < 5e-2, "bf16 path relative RMS error too large"

    # Larger shape: exercises the multi-step "parallel" grid (>=2 steps on v7x)
    # and a partial last block (nf=500 with tile=256), with NO wrapper pad copy.
    x2 = jax.random.normal(kx2, (2, 1000, D), dtype=jnp.float32)
    ref2 = jax.block_until_ready(rebind_reference(x2, wa, wb))
    out2_f32 = jax.block_until_ready(rebind_forward(x2, wa, wb, use_bf16=False))
    np.testing.assert_allclose(np.asarray(out2_f32), np.asarray(ref2),
                               rtol=2e-3, atol=2e-3)
    out2 = jax.block_until_ready(rebind_forward(x2, wa, wb))
    assert _rel_rms(out2, ref2) < 5e-2, "bf16 path relative RMS error too large"

    # Ragged row count (N % fold != 0): exercises the tiny k-alignment pad and
    # a block whose sublane dim equals the (non-multiple-of-8) array dim.
    x3 = jax.random.normal(kx3, (1, 37, D), dtype=jnp.float32)
    ref3 = jax.block_until_ready(rebind_reference(x3, wa, wb))
    out3 = jax.block_until_ready(rebind_forward(x3, wa, wb, use_bf16=False))
    np.testing.assert_allclose(np.asarray(out3), np.asarray(ref3),
                               rtol=2e-3, atol=2e-3)

    print("KERNEL_OK")
</pallas_src>

<mosaic_0001>
module attributes {stable_mosaic.version = 11 : i64} {
  func.func @_rebind_kernel(%arg0: i32, %arg1: memref<4x128xf32, #tpu.memory_space<vmem>>, %arg2: memref<128x768xf32, #tpu.memory_space<vmem>>, %arg3: memref<128x128xf32, #tpu.memory_space<vmem>>, %arg4: memref<128x128xf32, #tpu.memory_space<vmem>>, %arg5: memref<4x128xf32, #tpu.memory_space<vmem>>) attributes {dimension_semantics = [#tpu.dimension_semantics<parallel>], iteration_bounds = array<i64: 1>, scalar_prefetch = 0 : i64, scratch_operands = 0 : i64, tpu.core_type = #tpu.core_type<tc>, window_params = [{transform_indices = @transform_0, window_bounds = array<i64: 4, 128>}, {pipeline_mode = #tpu.pipeline_mode<synchronous>, transform_indices = @transform_1, window_bounds = array<i64: 128, 768>}, {pipeline_mode = #tpu.pipeline_mode<synchronous>, transform_indices = @transform_2, window_bounds = array<i64: 128, 128>}, {pipeline_mode = #tpu.pipeline_mode<synchronous>, transform_indices = @transform_3, window_bounds = array<i64: 128, 128>}, {transform_indices = @transform_4, window_bounds = array<i64: 4, 128>}]} {
    %c0 = arith.constant 0 : index
    %c0_0 = arith.constant 0 : index
    %0 = vector.load %arg1[%c0, %c0_0] : memref<4x128xf32, #tpu.memory_space<vmem>>, vector<4x128xf32>
    %c0_1 = arith.constant 0 : index
    %c0_2 = arith.constant 0 : index
    %1 = vector.load %arg2[%c0_1, %c0_2] : memref<128x768xf32, #tpu.memory_space<vmem>>, vector<128x768xf32>
    %cst = arith.constant dense<0.000000e+00> : vector<4x768xf32>
    %2 = tpu.matmul %0, %1, %cst {dimension_numbers = #tpu.dot_dimension_numbers<[1], [0], [0], [1], [0, 0, 1, 1], [], []>} : vector<4x128xf32>, vector<128x768xf32>, vector<4x768xf32> -> vector<4x768xf32>
    %3 = vector.extract_strided_slice %2 {offsets = [0, 0], sizes = [4, 128], strides = [1, 1]} : vector<4x768xf32> to vector<4x128xf32>
    %4 = vector.extract_strided_slice %2 {offsets = [0, 128], sizes = [4, 128], strides = [1, 1]} : vector<4x768xf32> to vector<4x128xf32>
    %5 = vector.extract_strided_slice %2 {offsets = [0, 256], sizes = [4, 128], strides = [1, 1]} : vector<4x768xf32> to vector<4x128xf32>
    %6 = vector.extract_strided_slice %2 {offsets = [0, 384], sizes = [4, 128], strides = [1, 1]} : vector<4x768xf32> to vector<4x128xf32>
    %7 = vector.extract_strided_slice %2 {offsets = [0, 512], sizes = [4, 128], strides = [1, 1]} : vector<4x768xf32> to vector<4x128xf32>
    %8 = vector.extract_strided_slice %2 {offsets = [0, 640], sizes = [4, 128], strides = [1, 1]} : vector<4x768xf32> to vector<4x128xf32>
    %9 = arith.mulf %3, %5 : vector<4x128xf32>
    %10 = arith.mulf %4, %6 : vector<4x128xf32>
    %11 = arith.addf %9, %10 : vector<4x128xf32>
    %12 = arith.mulf %4, %5 : vector<4x128xf32>
    %13 = arith.mulf %3, %6 : vector<4x128xf32>
    %14 = arith.subf %12, %13 : vector<4x128xf32>
    %15 = arith.mulf %11, %7 : vector<4x128xf32>
    %16 = arith.mulf %14, %8 : vector<4x128xf32>
    %17 = arith.subf %15, %16 : vector<4x128xf32>
    %18 = arith.mulf %11, %8 : vector<4x128xf32>
    %19 = arith.mulf %14, %7 : vector<4x128xf32>
    %20 = arith.addf %18, %19 : vector<4x128xf32>
    %c0_3 = arith.constant 0 : index
    %c0_4 = arith.constant 0 : index
    %21 = vector.load %arg3[%c0_3, %c0_4] : memref<128x128xf32, #tpu.memory_space<vmem>>, vector<128x128xf32>
    %cst_5 = arith.constant dense<0.000000e+00> : vector<4x128xf32>
    %22 = tpu.matmul %17, %21, %cst_5 {dimension_numbers = #tpu.dot_dimension_numbers<[1], [0], [0], [1], [0, 0, 1, 1], [], []>} : vector<4x128xf32>, vector<128x128xf32>, vector<4x128xf32> -> vector<4x128xf32>
    %c0_6 = arith.constant 0 : index
    %c0_7 = arith.constant 0 : index
    %23 = vector.load %arg4[%c0_6, %c0_7] : memref<128x128xf32, #tpu.memory_space<vmem>>, vector<128x128xf32>
    %cst_8 = arith.constant dense<0.000000e+00> : vector<4x128xf32>
    %24 = tpu.matmul %20, %23, %cst_8 {dimension_numbers = #tpu.dot_dimension_numbers<[1], [0], [0], [1], [0, 0, 1, 1], [], []>} : vector<4x128xf32>, vector<128x128xf32>, vector<4x128xf32> -> vector<4x128xf32>
    %25 = arith.addf %22, %24 : vector<4x128xf32>
    %c0_9 = arith.constant 0 : index
    %c0_10 = arith.constant 0 : index
    %26 = vector.load %arg5[%c0_9, %c0_10] : memref<4x128xf32, #tpu.memory_space<vmem>>, vector<4x128xf32>
    tpu.vector_store %arg5[%c0_9, %c0_10], %25 {strides = array<i32>} : memref<4x128xf32, #tpu.memory_space<vmem>>, vector<4x128xf32>,
    return
  }
  func.func @transform_0(%arg0: i32) -> (i32, i32) {
    %c0_i32 = arith.constant 0 : i32
    %c0_i32_0 = arith.constant 0 : i32
    return %arg0, %c0_i32 : i32, i32
  }
  func.func @transform_1(%arg0: i32) -> (i32, i32) {
    %c0_i32 = arith.constant 0 : i32
    %c0_i32_0 = arith.constant 0 : i32
    %c0_i32_1 = arith.constant 0 : i32
    return %c0_i32, %c0_i32_0 : i32, i32
  }
  func.func @transform_2(%arg0: i32) -> (i32, i32) {
    %c0_i32 = arith.constant 0 : i32
    %c0_i32_0 = arith.constant 0 : i32
    %c0_i32_1 = arith.constant 0 : i32
    return %c0_i32, %c0_i32_0 : i32, i32
  }
  func.func @transform_3(%arg0: i32) -> (i32, i32) {
    %c0_i32 = arith.constant 0 : i32
    %c0_i32_0 = arith.constant 0 : i32
    %c0_i32_1 = arith.constant 0 : i32
    return %c0_i32, %c0_i32_0 : i32, i32
  }
  func.func @transform_4(%arg0: i32) -> (i32, i32) {
    %c0_i32 = arith.constant 0 : i32
    %c0_i32_0 = arith.constant 0 : i32
    return %arg0, %c0_i32 : i32, i32
  }
}

</mosaic_0001>

<bundles_post_ra>
// kernel: tpu_custom_call.1
= control target key start
LH: loop header
LB: loop body
LE: loop exit
PB: predicated region body
PF: predicated region fallthrough
CT: control target
= control target key end

     0   :  { %9 = vsyncpa [#allocation3], 0  ;;  %s1083_s0 = inlined_call_operand.hbm [shape: f32[4,128], index: 0, kind: input, shape index: {}]   ;;  %s1084_s1 = inlined_call_operand.hbm [shape: f32[128,768], index: 1, kind: input, shape index: {}]   ;;  %s1085_s2 = inlined_call_operand.hbm [shape: f32[128,128], index: 2, kind: input, shape index: {}]   ;;  %s1086_s3 = inlined_call_operand.hbm [shape: f32[128,128], index: 3, kind: input, shape index: {}]   ;;  %s1087_s4 = inlined_call_operand.hbm [shape: f32[4,128], index: 4, kind: output, shape index: {}]  }
   0x1   :  { %10 = vsyncpa [#allocation6], 0 }
   0x2   :  { %11 = vsyncpa [#allocation9], 0 }
   0x3   :  { %12 = vsyncpa [#allocation4], 0  ;;  %s963_s15 = smov [#allocation5]   ;;  %s845_s19 = scalar_lea.hbm %s1084_s1, 12288 }
   0x4   :  { %s28_s16 = sshll.u32 %s963_s15, 4  ;;  %p846_p0 = scmp.ne.s32.totalorder %s1084_s1, %s845_s19  ;;  %s29_s16 = int_to_ptr.vmem [resolvable:$true] %s28_s16 }
   0x5   :  { %p849_p1 = scmp.lt.u32.totalorder %s845_s19, %s1084_s1 }
   0x7   :  { %p851_p2 = pnand %p849_p1, %p846_p0 }
   0x9   :  { %854 = shalt.err (!%p851_p2)
}
   0xa   :  { %s855_s24 = scalar_lea.vmem %s29_s16, 12288  ;;  %p860_p4 = scmp.lt.s32.totalorder %s29_s16, %s29_s16 }
   0xb   :  { %p856_p3 = scmp.ne.s32.totalorder %s29_s16, %s855_s24  ;;  %p861_p5 = scmp.lt.s32.totalorder %s855_s24, %s855_s24 }
   0xd   :  { %p862_p6 = por %p861_p5, %p860_p4 }
   0xf   :  { %p863_p7 = pnand %p862_p6, %p856_p3 }
  0x11   :  { %866 = shalt.err (!%p863_p7)
}
  0x12   :  { %s964_s25 = smov 768   ;;  %s965_s26 = smov 48  }
  0x13   :  { %34 = dma.hbm_to_vmem [thread:$0]  %s1084_s1, 12288, %s29_s16, [#allocation6], %s964_s25, %s964_s25, %s965_s26  }
  0x14   :  { %s966_s29 = smov [#allocation2]   ;;  %s967_s5 = smov [#allocation7]  }
  0x15   :  { %s19_s30 = sshll.u32 %s966_s29, 4  ;;  %s40_s6 = sshll.u32 %s967_s5, 4  ;;  %s20_s30 = int_to_ptr.vmem [resolvable:$true] %s19_s30  ;;  %s41_s6 = int_to_ptr.vmem [resolvable:$true] %s40_s6 }
  0x16   :  { %s867_s9 = scalar_lea.hbm %s1083_s0, 64 }
  0x17   :  { %p868_p8 = scmp.ne.s32.totalorder %s1083_s0, %s867_s9  ;;  %p871_p9 = scmp.lt.u32.totalorder %s867_s9, %s1083_s0 }
  0x19   :  { %p873_p10 = pnand %p871_p9, %p868_p8 }
  0x1b   :  { %876 = shalt.err (!%p873_p10)
}
  0x1c   :  { %s877_s1 = scalar_lea.vmem %s20_s30, 64  ;;  %p882_p12 = scmp.lt.s32.totalorder %s20_s30, %s20_s30 }
  0x1d   :  { %p878_p11 = scmp.ne.s32.totalorder %s20_s30, %s877_s1  ;;  %p883_p13 = scmp.lt.s32.totalorder %s877_s1, %s877_s1 }
  0x1f   :  { %p884_p0 = por %p883_p13, %p882_p12 }
  0x21   :  { %p885_p1 = pnand %p884_p0, %p878_p11 }
  0x23   :  { %888 = shalt.err (!%p885_p1)
}
  0x24   :  { %22 = dma.hbm_to_vmem [thread:$0]  %s1083_s0, 64, %s20_s30, [#allocation3]  }
  0x25   :  { %s889_s18 = scalar_lea.hbm %s1085_s2, 2048 }
  0x26   :  { %p890_p2 = scmp.ne.s32.totalorder %s1085_s2, %s889_s18  ;;  %p893_p3 = scmp.lt.u32.totalorder %s889_s18, %s1085_s2 }
  0x28   :  { %p895_p4 = pnand %p893_p3, %p890_p2 }
  0x2a   :  { %898 = shalt.err (!%p895_p4)
}
  0x2b   :  { %s899_s23 = scalar_lea.vmem %s41_s6, 2048  ;;  %p904_p6 = scmp.lt.s32.totalorder %s41_s6, %s41_s6 }
  0x2c   :  { %p900_p5 = scmp.ne.s32.totalorder %s41_s6, %s899_s23  ;;  %p905_p7 = scmp.lt.s32.totalorder %s899_s23, %s899_s23 }
  0x2e   :  { %p906_p8 = por %p905_p7, %p904_p6 }
  0x30   :  { %p907_p9 = pnand %p906_p8, %p900_p5 }
  0x32   :  { %910 = shalt.err (!%p907_p9)
}
  0x33   :  { %s968_s0 = smov 128   ;;  %s969_s24 = smov 8  }
  0x34   :  { %46 = dma.hbm_to_vmem [thread:$0]  %s1085_s2, 2048, %s41_s6, [#allocation6], %s968_s0, %s968_s0, %s969_s24  }
  0x35   :  { %s970_s27 = smov [#allocation8]   ;;  %s911_s5 = scalar_lea.hbm %s1086_s3, 2048 }
  0x36   :  { %s52_s28 = sshll.u32 %s970_s27, 4  ;;  %p912_p10 = scmp.ne.s32.totalorder %s1086_s3, %s911_s5  ;;  %s53_s28 = int_to_ptr.vmem [resolvable:$true] %s52_s28 }
  0x37   :  { %p915_p11 = scmp.lt.u32.totalorder %s911_s5, %s1086_s3 }
  0x39   :  { %p917_p12 = pnand %p915_p11, %p912_p10 }
  0x3b   :  { %920 = shalt.err (!%p917_p12)
}
  0x3c   :  { %s921_s11 = scalar_lea.vmem %s53_s28, 2048  ;;  %p926_p0 = scmp.lt.s32.totalorder %s53_s28, %s53_s28 }
  0x3d   :  { %p922_p13 = scmp.ne.s32.totalorder %s53_s28, %s921_s11  ;;  %p927_p1 = scmp.lt.s32.totalorder %s921_s11, %s921_s11 }
  0x3f   :  { %p928_p2 = por %p927_p1, %p926_p0 }
  0x41   :  { %p929_p3 = pnand %p928_p2, %p922_p13 }
  0x43   :  { %932 = shalt.err (!%p929_p3)
}
  0x44   :  { %58 = dma.hbm_to_vmem [thread:$0]  %s1086_s3, 2048, %s53_s28, [#allocation9], %s968_s0, %s968_s0, %s969_s24  }
  0x45   :  { %955 = dma.done.wait [#allocation3], 64  }
  0x46   :  { %956 = vsyncadd [#allocation3], 4294967232 }
  0x47   :  { %957 = dma.done.wait [#allocation6], 14336  }
  0x48   :  { %958 = vsyncadd [#allocation6], 4294952960 }
  0x49   :  { %959 = dma.done.wait [#allocation9], 2048  }
  0x4a   :  { %960 = vsyncadd [#allocation9], 4294965248  ;;  %v971_v0 = vmov 0.0   ;;  %v73_v1 = vld [vmem:[#allocation5 + $0x8] sm:$0xff]  ;;  %v79_v2 = vld [vmem:[#allocation5 + $0x38] sm:$0xff]  ;;  %vm973_vm0 = vmmov 0  }
  0x4b   :  { %232 = vmatprep.mubr.f32.mxu0 %v971_v0  ;;  %303 = vmatprep.mubr.f32.mxu1 %v971_v0  ;;  %v75_v3 = vld [vmem:[#allocation5 + $0x18] sm:$0xff]  ;;  %v687_v4 = vpack.c.bf16 %v79_v2, %v73_v1  ;;  %v81_v5 = vld [vmem:[#allocation5 + $0x48] sm:$0xff]  ;;  %v72_v6 = vld [vmem:[#allocation5] sm:$0xff]  ;;  %s974_s3 = smov [#allocation10]  }
  0x4c   :  { %v78_v7 = vld [vmem:[#allocation5 + $0x30] sm:$0xff]  ;;  %v719_v8 = vpack.c.bf16 %v81_v5, %v75_v3  ;;  %v80_v11 = vld [vmem:[#allocation5 + $0x40] sm:$0xff]  ;;  %v85_v12 = vld [vmem:[#allocation5 + $0x68] sm:$0xff]  ;;  %s572_s12 = sshll.u32 %s974_s3, 4  ;;  %s573_s12 = int_to_ptr.vmem [resolvable:$true] %s572_s12 }
  0x4d   :  { %v689_v9 = vpack.c.bf16 %v78_v7, %v72_v6  ;;  %v74_v10 = vld [vmem:[#allocation5 + $0x10] sm:$0xff]  ;;  %688 = vmatprep.subr.bf16.mxu0 %v687_v4  ;;  %v91_v14 = vld [vmem:[#allocation5 + $0x98] sm:$0xff]  ;;  %v93_v16 = vld [vmem:[#allocation5 + $0xa8] sm:$0xff]  ;;  %s933_s13 = scalar_lea.vmem %s573_s12, 64  ;;  %p938_p5 = scmp.lt.s32.totalorder %s573_s12, %s573_s12 }
  0x4e   :  { %v721_v13 = vpack.c.bf16 %v80_v11, %v74_v10  ;;  %v87_v15 = vld [vmem:[#allocation5 + $0x78] sm:$0xff]  ;;  %720 = vmatprep.subr.bf16.mxu1 %v719_v8  ;;  %v691_v17 = vpack.c.bf16 %v91_v14, %v85_v12  ;;  %v84_v19 = vld [vmem:[#allocation5 + $0x60] sm:$0xff]  ;;  %v90_v20 = vld [vmem:[#allocation5 + $0x90] sm:$0xff]  ;;  %p934_p4 = scmp.ne.s32.totalorder %s573_s12, %s933_s13  ;;  %p939_p6 = scmp.lt.s32.totalorder %s933_s13, %s933_s13 }
  0x4f   :  { %690 = vmatpush1.bf16.msra.mxu0 %v689_v9  ;;  %v723_v18 = vpack.c.bf16 %v93_v16, %v87_v15  ;;  %v86_v21 = vld [vmem:[#allocation5 + $0x70] sm:$0xff]  ;;  %v693_v22 = vpack.c.bf16 %v90_v20, %v84_v19  ;;  %v92_v23 = vld [vmem:[#allocation5 + $0xa0] sm:$0xff]  ;;  %v97_v24 = vld [vmem:[#allocation5 + $0xc8] sm:$0xff] }
  0x50   :  { %722 = vmatpush1.bf16.msra.mxu1 %v721_v13  ;;  %v103_v25 = vld [vmem:[#allocation5 + $0xf8] sm:$0xff]  ;;  %692 = vmatprep.subr.bf16.mxu0 %v691_v17  ;;  %v725_v26 = vpack.c.bf16 %v92_v23, %v86_v21  ;;  %v105_v29 = vld [vmem:[#allocation5 + $0x108] sm:$0xff]  ;;  %v96_v30 = vld [vmem:[#allocation5 + $0xc0] sm:$0xff]  ;;  %p940_p7 = por %p939_p6, %p938_p5 }
  0x51   :  { %724 = vmatprep.subr.bf16.mxu1 %v723_v18  ;;  %v695_v27 = vpack.c.bf16 %v103_v25, %v97_v24  ;;  %v99_v28 = vld [vmem:[#allocation5 + $0xd8] sm:$0xff]  ;;  %v102_v32 = vld [vmem:[#allocation5 + $0xf0] sm:$0xff]  ;;  %v104_v34 = vld [vmem:[#allocation5 + $0x100] sm:$0xff] }
  0x52   :  { %v727_v31 = vpack.c.bf16 %v105_v29, %v99_v28  ;;  %v98_v33 = vld [vmem:[#allocation5 + $0xd0] sm:$0xff]  ;;  %v697_v35 = vpack.c.bf16 %v102_v32, %v96_v30  ;;  %v109_v36 = vld [vmem:[#allocation5 + $0x128] sm:$0xff]  ;;  %v115_v37 = vld [vmem:[#allocation5 + $0x158] sm:$0xff]  ;;  %p941_p8 = pnand %p940_p7, %p934_p4 }
  0x53   :  { %694 = vmatpush1.bf16.msra.mxu0 %v693_v22  ;;  %v111_v38 = vld [vmem:[#allocation5 + $0x138] sm:$0xff]  ;;  %v729_v39 = vpack.c.bf16 %v104_v34, %v98_v33  ;;  %v699_v40 = vpack.c.bf16 %v115_v37, %v109_v36  ;;  %v117_v41 = vld [vmem:[#allocation5 + $0x168] sm:$0xff]  ;;  %v108_v42 = vld [vmem:[#allocation5 + $0x120] sm:$0xff] }
  0x54   :  { %726 = vmatpush1.bf16.msra.mxu1 %v725_v26  ;;  %696 = vmatprep.subr.bf16.mxu0 %v695_v27  ;;  %v114_v43 = vld [vmem:[#allocation5 + $0x150] sm:$0xff]  ;;  %v731_v44 = vpack.c.bf16 %v117_v41, %v111_v38  ;;  %v116_v46 = vld [vmem:[#allocation5 + $0x160] sm:$0xff]  ;;  %v121_v47 = vld [vmem:[#allocation5 + $0x188] sm:$0xff] }
  0x55   :  { %728 = vmatprep.subr.bf16.mxu1 %v727_v31  ;;  %v110_v45 = vld [vmem:[#allocation5 + $0x130] sm:$0xff]  ;;  %v127_v48 = vld [vmem:[#allocation5 + $0x1b8] sm:$0xff]  ;;  %v129_v50 = vld [vmem:[#allocation5 + $0x1c8] sm:$0xff]  ;;  %v701_v51 = vpack.c.bf16 %v114_v43, %v108_v42 }
  0x56   :  { %v123_v49 = vld [vmem:[#allocation5 + $0x198] sm:$0xff]  ;;  %v733_v52 = vpack.c.bf16 %v116_v46, %v110_v45  ;;  %v703_v53 = vpack.c.bf16 %v127_v48, %v121_v47  ;;  %v120_v54 = vld [vmem:[#allocation5 + $0x180] sm:$0xff]  ;;  %v126_v55 = vld [vmem:[#allocation5 + $0x1b0] sm:$0xff] }
  0x57   :  { %698 = vmatpush1.bf16.msra.mxu0 %v697_v35  ;;  %v122_v56 = vld [vmem:[#allocation5 + $0x190] sm:$0xff]  ;;  %v735_v57 = vpack.c.bf16 %v129_v50, %v123_v49  ;;  %v128_v58 = vld [vmem:[#allocation5 + $0x1c0] sm:$0xff]  ;;  %v133_v59 = vld [vmem:[#allocation5 + $0x1e8] sm:$0xff]  ;;  %v705_v63 = vpack.c.bf16 %v126_v55, %v120_v54 }
  0x58   :  { %730 = vmatpush1.bf16.msra.mxu1 %v729_v39  ;;  %700 = vmatprep.subr.bf16.mxu0 %v699_v40  ;;  %v139_v60 = vld [vmem:[#allocation5 + $0x218] sm:$0xff]  ;;  %v141_v62 = vld [vmem:[#allocation5 + $0x228] sm:$0xff]  ;;  %v737_v1 = vpack.c.bf16 %v128_v58, %v122_v56  ;;  %v132_v3 = vld [vmem:[#allocation5 + $0x1e0] sm:$0xff] }
  0x59   :  { %732 = vmatprep.subr.bf16.mxu1 %v731_v44  ;;  %v135_v61 = vld [vmem:[#allocation5 + $0x1f8] sm:$0xff]  ;;  %v707_v2 = vpack.c.bf16 %v139_v60, %v133_v59  ;;  %v138_v4 = vld [vmem:[#allocation5 + $0x210] sm:$0xff]  ;;  %v140_v7 = vld [vmem:[#allocation5 + $0x220] sm:$0xff] }
  0x5a   :  { %v134_v5 = vld [vmem:[#allocation5 + $0x1f0] sm:$0xff]  ;;  %v739_v6 = vpack.c.bf16 %v141_v62, %v135_v61  ;;  %v145_v8 = vld [vmem:[#allocation5 + $0x248] sm:$0xff]  ;;  %v151_v9 = vld [vmem:[#allocation5 + $0x278] sm:$0xff]  ;;  %v709_v12 = vpack.c.bf16 %v138_v4, %v132_v3 }
  0x5b   :  { %702 = vmatpush1.bf16.msra.mxu0 %v701_v51  ;;  %v147_v10 = vld [vmem:[#allocation5 + $0x258] sm:$0xff]  ;;  %v153_v11 = vld [vmem:[#allocation5 + $0x288] sm:$0xff]  ;;  %v741_v13 = vpack.c.bf16 %v140_v7, %v134_v5  ;;  %v711_v14 = vpack.c.bf16 %v151_v9, %v145_v8  ;;  %v144_v15 = vld [vmem:[#allocation5 + $0x240] sm:$0xff] }
  0x5c   :  { %734 = vmatpush1.bf16.msra.mxu1 %v733_v52  ;;  %704 = vmatprep.subr.bf16.mxu0 %v703_v53  ;;  %v150_v16 = vld [vmem:[#allocation5 + $0x270] sm:$0xff]  ;;  %v743_v18 = vpack.c.bf16 %v153_v11, %v147_v10  ;;  %v152_v19 = vld [vmem:[#allocation5 + $0x280] sm:$0xff]  ;;  %v157_v20 = vld [vmem:[#allocation5 + $0x2a8] sm:$0xff] }
  0x5d   :  { %736 = vmatprep.subr.bf16.mxu1 %v735_v57  ;;  %v146_v17 = vld [vmem:[#allocation5 + $0x250] sm:$0xff]  ;;  %v163_v21 = vld [vmem:[#allocation5 + $0x2d8] sm:$0xff]  ;;  %v165_v23 = vld [vmem:[#allocation5 + $0x2e8] sm:$0xff]  ;;  %v713_v24 = vpack.c.bf16 %v150_v16, %v144_v15 }
  0x5e   :  { %v159_v22 = vld [vmem:[#allocation5 + $0x2b8] sm:$0xff]  ;;  %v745_v25 = vpack.c.bf16 %v152_v19, %v146_v17  ;;  %v715_v26 = vpack.c.bf16 %v163_v21, %v157_v20  ;;  %v156_v27 = vld [vmem:[#allocation5 + $0x2a0] sm:$0xff]  ;;  %v162_v28 = vld [vmem:[#allocation5 + $0x2d0] sm:$0xff] }
  0x5f   :  { %706 = vmatpush1.bf16.msra.mxu0 %v705_v63  ;;  %v158_v29 = vld [vmem:[#allocation5 + $0x2b0] sm:$0xff]  ;;  %v747_v30 = vpack.c.bf16 %v165_v23, %v159_v22  ;;  %v164_v31 = vld [vmem:[#allocation5 + $0x2e0] sm:$0xff]  ;;  %v77_v32 = vld [vmem:[#allocation5 + $0x28] sm:$0xff]  ;;  %v717_v34 = vpack.c.bf16 %v162_v28, %v156_v27  ;;  %v972_v23 = vmov 0.0|0.0  }
  0x60   :  { %738 = vmatpush1.bf16.msra.mxu1 %v737_v1  ;;  %708 = vmatprep.subr.bf16.mxu0 %v707_v2  ;;  %v83_v33 = vld [vmem:[#allocation5 + $0x58] sm:$0xff]  ;;  %v749_v35 = vpack.c.bf16 %v164_v31, %v158_v29  ;;  %v76_v37 = vld [vmem:[#allocation5 + $0x20] sm:$0xff]  ;;  %v82_v38 = vld [vmem:[#allocation5 + $0x50] sm:$0xff] }
  0x61   :  { %740 = vmatprep.subr.bf16.mxu1 %v739_v6  ;;  %v751_v36 = vpack.c.bf16 %v83_v33, %v77_v32  ;;  %v89_v39 = vld [vmem:[#allocation5 + $0x88] sm:$0xff]  ;;  %v95_v40 = vld [vmem:[#allocation5 + $0xb8] sm:$0xff]  ;;  %v753_v42 = vpack.c.bf16 %v82_v38, %v76_v37  ;;  %v88_v44 = vld [vmem:[#allocation5 + $0x80] sm:$0xff] }
  0x62   :  { %v71_v41 = vld [vmem:[#allocation2] sm:$0xf]  ;;  %v755_v43 = vpack.c.bf16 %v95_v40, %v89_v39  ;;  %v94_v45 = vld [vmem:[#allocation5 + $0xb0] sm:$0xff]  ;;  %v101_v46 = vld [vmem:[#allocation5 + $0xe8] sm:$0xff] }
  0x63   :  { %710 = vmatpush1.bf16.msra.mxu0 %v709_v12  ;;  %v107_v47 = vld [vmem:[#allocation5 + $0x118] sm:$0xff]  ;;  %v757_v48 = vpack.c.bf16 %v94_v45, %v88_v44  ;;  %v100_v50 = vld [vmem:[#allocation5 + $0xe0] sm:$0xff]  ;;  %v106_v51 = vld [vmem:[#allocation5 + $0x110] sm:$0xff] }
  0x64   :  { %742 = vmatpush1.bf16.msra.mxu1 %v741_v13  ;;  %712 = vmatprep.subr.bf16.mxu0 %v711_v14  ;;  %v759_v49 = vpack.c.bf16 %v107_v47, %v101_v46  ;;  %v113_v52 = vld [vmem:[#allocation5 + $0x148] sm:$0xff]  ;;  %v119_v53 = vld [vmem:[#allocation5 + $0x178] sm:$0xff]  ;;  %v761_v54 = vpack.c.bf16 %v106_v51, %v100_v50  ;;  %v112_v56 = vld [vmem:[#allocation5 + $0x140] sm:$0xff] }
  0x65   :  { %744 = vmatprep.subr.bf16.mxu1 %v743_v18  ;;  %v763_v55 = vpack.c.bf16 %v119_v53, %v113_v52  ;;  %v118_v57 = vld [vmem:[#allocation5 + $0x170] sm:$0xff]  ;;  %v125_v58 = vld [vmem:[#allocation5 + $0x1a8] sm:$0xff]  ;;  %v131_v59 = vld [vmem:[#allocation5 + $0x1d8] sm:$0xff] }
  0x66   :  { %v765_v60 = vpack.c.bf16 %v118_v57, %v112_v56  ;;  %v767_v61 = vpack.c.bf16 %v131_v59, %v125_v58  ;;  %v124_v62 = vld [vmem:[#allocation5 + $0x1a0] sm:$0xff]  ;;  %v130_v63 = vld [vmem:[#allocation5 + $0x1d0] sm:$0xff]  ;;  %v137_v1 = vld [vmem:[#allocation5 + $0x208] sm:$0xff] }
  0x67   :  { %714 = vmatpush1.bf16.msra.mxu0 %v713_v24  ;;  %v143_v2 = vld [vmem:[#allocation5 + $0x238] sm:$0xff]  ;;  %v769_v3 = vpack.c.bf16 %v130_v63, %v124_v62  ;;  %v136_v5 = vld [vmem:[#allocation5 + $0x200] sm:$0xff]  ;;  %v142_v6 = vld [vmem:[#allocation5 + $0x230] sm:$0xff] }
  0x68   :  { %746 = vmatpush1.bf16.msra.mxu1 %v745_v25  ;;  %716 = vmatprep.subr.bf16.mxu0 %v715_v26  ;;  %v771_v4 = vpack.c.bf16 %v143_v2, %v137_v1  ;;  %v149_v7 = vld [vmem:[#allocation5 + $0x268] sm:$0xff]  ;;  %v155_v8 = vld [vmem:[#allocation5 + $0x298] sm:$0xff]  ;;  %v773_v9 = vpack.c.bf16 %v142_v6, %v136_v5  ;;  %v148_v11 = vld [vmem:[#allocation5 + $0x260] sm:$0xff] }
  0x69   :  { %748 = vmatprep.subr.bf16.mxu1 %v747_v30  ;;  %v775_v10 = vpack.c.bf16 %v155_v8, %v149_v7  ;;  %v154_v12 = vld [vmem:[#allocation5 + $0x290] sm:$0xff]  ;;  %v161_v13 = vld [vmem:[#allocation5 + $0x2c8] sm:$0xff]  ;;  %v167_v14 = vld [vmem:[#allocation5 + $0x2f8] sm:$0xff] }
  0x6a   :  { %v777_v15 = vpack.c.bf16 %v154_v12, %v148_v11  ;;  %v779_v16 = vpack.c.bf16 %v167_v14, %v161_v13  ;;  %v160_v17 = vld [vmem:[#allocation5 + $0x2c0] sm:$0xff]  ;;  %v166_v18 = vld [vmem:[#allocation5 + $0x2f0] sm:$0xff]  ;;  %v410_v21 = vld [vmem:[#allocation8 + $0x8] sm:$0xff] }
  0x6b   :  { %718 = vmatpush1.bf16.msra.mxu0 %v717_v34  ;;  %v781_v19 = vpack.c.bf16 %v166_v18, %v160_v17  ;;  %v409_v20 = vld [vmem:[#allocation8] sm:$0xff]  ;;  %v411_v22 = vld [vmem:[#allocation8 + $0x10] sm:$0xff]  ;;  %v412_v25 = vld [vmem:[#allocation8 + $0x18] sm:$0xff] }
  0x6c   :  { %750 = vmatpush1.bf16.msra.mxu1 %v749_v35  ;;  %752 = vmatprep.subr.bf16.mxu0 %v751_v36  ;;  %v784_v24 = vpack.c.bf16 %v410_v21, %v409_v20  ;;  %v787_v26 = vpack.c.bf16 %v412_v25, %v411_v22  ;;  %v413_v27 = vld [vmem:[#allocation8 + $0x20] sm:$0xff]  ;;  %v414_v28 = vld [vmem:[#allocation8 + $0x28] sm:$0xff]  ;;  %v415_v30 = vld [vmem:[#allocation8 + $0x30] sm:$0xff] }
  0x6d   :  { %783 = vmatprep.subr.bf16.mxu1 %v972_v23  ;;  %v790_v29 = vpack.c.bf16 %v414_v28, %v413_v27  ;;  %v416_v31 = vld [vmem:[#allocation8 + $0x38] sm:$0xff]  ;;  %v417_v33 = vld [vmem:[#allocation8 + $0x40] sm:$0xff]  ;;  %v418_v34 = vld [vmem:[#allocation8 + $0x48] sm:$0xff] }
  0x6e   :  { %233 = vmatmul.mubr.f32.vlgmr.msra.gmra.mrb[0].mxu0 %v71_v41  ;;  %v793_v32 = vpack.c.bf16 %v416_v31, %v415_v30  ;;  %v796_v35 = vpack.c.bf16 %v418_v34, %v417_v33  ;;  %v419_v36 = vld [vmem:[#allocation8 + $0x50] sm:$0xff]  ;;  %v420_v37 = vld [vmem:[#allocation8 + $0x58] sm:$0xff]  ;;  %v421_v39 = vld [vmem:[#allocation8 + $0x60] sm:$0xff] }
  0x6f   :  { %304 = vmatmul.mubr.f32.vlgmr.msra.gmra.mrb[0].mxu1 %v71_v41  ;;  %754 = vmatpush1.bf16.msra.mxu0 %v753_v42  ;;  %v799_v38 = vpack.c.bf16 %v420_v37, %v419_v36  ;;  %v422_v40 = vld [vmem:[#allocation8 + $0x68] sm:$0xff]  ;;  %v423_v42 = vld [vmem:[#allocation8 + $0x70] sm:$0xff]  ;;  %v393_v56 = vld [vmem:[#allocation7] sm:$0xff] }
  0x70   :  { %756 = vmatprep.subr.bf16.mxu0 %v755_v43  ;;  %374 = vmatprep.mubr.f32.mxu0 %v971_v0  ;;  %v424_v43 = vld [vmem:[#allocation8 + $0x78] sm:$0xff]  ;;  %v394_v57 = vld [vmem:[#allocation7 + $0x8] sm:$0xff]  ;;  %v397_v6 = vld [vmem:[#allocation7 + $0x20] sm:$0xff] }
  0x71   :  { %785 = vmatpush3.bf16.msra.mxu1 %v784_v24  ;;  %v805_v44 = vpack.c.bf16 %v424_v43, %v423_v42  ;;  %649 = vmatprep.mubr.msk.f32.mxu1 %vm973_vm0, %v971_v0  ;;  %v808_v63 = vpack.c.bf16 %v394_v57, %v393_v56  ;;  %v398_v7 = vld [vmem:[#allocation7 + $0x28] sm:$0xff]  ;;  %v401_v12 = vld [vmem:[#allocation7 + $0x40] sm:$0xff]  ;;  %v407_v20 = vld [vmem:[#allocation7 + $0x70] sm:$0xff] }
  0x72   :  { %786 = vmatprep.subr.bf16.mxu1 %v972_v23  ;;  %v814_v8 = vpack.c.bf16 %v398_v7, %v397_v6  ;;  %v402_v13 = vld [vmem:[#allocation7 + $0x48] sm:$0xff]  ;;  %v405_v17 = vld [vmem:[#allocation7 + $0x60] sm:$0xff]  ;;  %v408_v21 = vld [vmem:[#allocation7 + $0x78] sm:$0xff] }
  0x73   :  { %758 = vmatpush1.bf16.msra.mxu0 %v757_v48  ;;  %v820_v14 = vpack.c.bf16 %v402_v13, %v401_v12  ;;  %v406_v18 = vld [vmem:[#allocation7 + $0x68] sm:$0xff]  ;;  %v829_v22 = vpack.c.bf16 %v408_v21, %v407_v20 }
  0x74   :  { %760 = vmatprep.subr.bf16.mxu0 %v759_v49 }
  0x75   :  { %788 = vmatpush3.bf16.msra.mxu1 %v787_v26 }
  0x76   :  { %789 = vmatprep.subr.bf16.mxu1 %v972_v23 }
  0x77   :  { %762 = vmatpush1.bf16.msra.mxu0 %v761_v54 }
  0x78   :  { %764 = vmatprep.subr.bf16.mxu0 %v763_v55 }
  0x79   :  { %791 = vmatpush3.bf16.msra.mxu1 %v790_v29 }
  0x7a   :  { %792 = vmatprep.subr.bf16.mxu1 %v972_v23 }
  0x7b   :  { %766 = vmatpush1.bf16.msra.mxu0 %v765_v60 }
  0x7c   :  { %768 = vmatprep.subr.bf16.mxu0 %v767_v61 }
  0x7d   :  { %794 = vmatpush3.bf16.msra.mxu1 %v793_v32 }
  0x7e   :  { %795 = vmatprep.subr.bf16.mxu1 %v972_v23 }
  0x7f   :  { %770 = vmatpush1.bf16.msra.mxu0 %v769_v3  ;;  %v395_v3 = vld [vmem:[#allocation7 + $0x10] sm:$0xff] }
  0x80   :  { %772 = vmatprep.subr.bf16.mxu0 %v771_v4  ;;  %v396_v4 = vld [vmem:[#allocation7 + $0x18] sm:$0xff] }
  0x81   :  { %797 = vmatpush3.bf16.msra.mxu1 %v796_v35  ;;  %v811_v5 = vpack.c.bf16 %v396_v4, %v395_v3 }
  0x82   :  { %798 = vmatprep.subr.bf16.mxu1 %v972_v23 }
  0x83   :  { %774 = vmatpush1.bf16.msra.mxu0 %v773_v9  ;;  %v399_v9 = vld [vmem:[#allocation7 + $0x30] sm:$0xff] }
  0x84   :  { %776 = vmatprep.subr.bf16.mxu0 %v775_v10  ;;  %v400_v10 = vld [vmem:[#allocation7 + $0x38] sm:$0xff] }
  0x85   :  { %800 = vmatpush3.bf16.msra.mxu1 %v799_v38  ;;  %v817_v11 = vpack.c.bf16 %v400_v10, %v399_v9 }
  0x86   :  { %801 = vmatprep.subr.bf16.mxu1 %v972_v23 }
  0x87   :  { %778 = vmatpush1.bf16.msra.mxu0 %v777_v15  ;;  %v404_v15 = vld [vmem:[#allocation7 + $0x58] sm:$0xff] }
  0x88   :  { %780 = vmatprep.subr.bf16.mxu0 %v779_v16 }
  0x8b   :  { %782 = vmatpush1.bf16.msra.mxu0 %v781_v19  ;;  %v826_v19 = vpack.c.bf16 %v406_v18, %v405_v17 }
  0x8e   :  { %375 = vmatmul.mubr.f32.vlgmr.msra.gmra.mrb[2].mxu0 %v71_v41  ;;  %v802_v41 = vpack.c.bf16 %v422_v40, %v421_v39 }
  0x90   :  { %803 = vmatpush3.bf16.msra.mxu1 %v802_v41 }
  0x91   :  { %804 = vmatprep.subr.bf16.mxu1 %v972_v23 }
  0x94   :  { %806 = vmatpush3.bf16.msra.mxu1 %v805_v44 }
  0x95   :  { %807 = vmatprep.subr.bf16.mxu1 %v972_v23 }
 0x141   :  { %v234_v45 = vpop.f32.mrb[0].mxu0 }
 0x142   :  { %v305_v46 = vpop.f32.mrb[0].mxu1  ;;  %v236_v47 = vpop.f32.mrb[1].mxu0 }
 0x143   :  { %v381_v48 = vmul.f32 %v305_v46, %v234_v45  ;;  %v384_v49 = vmul.f32 %v305_v46, %v236_v47  ;;  %v307_v50 = vpop.f32.mrb[1].mxu1 }
 0x144   :  { %v382_v51 = vmul.f32 %v307_v50, %v236_v47  ;;  %v385_v52 = vmul.f32 %v307_v50, %v234_v45 }
 0x146   :  { %v383_v53 = vadd.f32 %v382_v51, %v381_v48  ;;  %v386_v54 = vsub.f32 %v384_v49, %v385_v52 }
 0x161   :  { %v376_v55 = vpop.f32.mrb[2].mxu0 }
 0x162   :  { %v387_v58 = vmul.f32 %v383_v53, %v376_v55  ;;  %v391_v59 = vmul.f32 %v386_v54, %v376_v55  ;;  %v378_v60 = vpop.f32.mrb[3].mxu0 }
 0x163   :  { %v388_v61 = vmul.f32 %v386_v54, %v378_v60  ;;  %v390_v62 = vmul.f32 %v383_v53, %v378_v60 }
 0x165   :  { %v389_v1 = vsub.f32 %v387_v58, %v388_v61  ;;  %v392_v2 = vadd.f32 %v391_v59, %v390_v62 }
 0x167   :  { %650 = vmatmul.mubr.f32.vlgmr.msra.gmra.mrb[2].mxu1 %v392_v2 }
 0x168   :  { %809 = vmatpush3.bf16.msra.mxu1 %v808_v63  ;;  %684 = vmatprep.mubr.msk.f32.mxu1 %vm973_vm0, %v971_v0  ;;  %v403_v0 = vld [vmem:[#allocation7 + $0x50] sm:$0xff] }
 0x169   :  { %810 = vmatprep.subr.bf16.mxu1 %v972_v23  ;;  %v823_v16 = vpack.c.bf16 %v404_v15, %v403_v0 }
 0x16c   :  { %812 = vmatpush3.bf16.msra.mxu1 %v811_v5 }
 0x16d   :  { %813 = vmatprep.subr.bf16.mxu1 %v972_v23 }
 0x170   :  { %815 = vmatpush3.bf16.msra.mxu1 %v814_v8 }
 0x171   :  { %816 = vmatprep.subr.bf16.mxu1 %v972_v23 }
 0x174   :  { %818 = vmatpush3.bf16.msra.mxu1 %v817_v11 }
 0x175   :  { %819 = vmatprep.subr.bf16.mxu1 %v972_v23 }
 0x178   :  { %821 = vmatpush3.bf16.msra.mxu1 %v820_v14 }
 0x179   :  { %822 = vmatprep.subr.bf16.mxu1 %v972_v23 }
 0x17c   :  { %824 = vmatpush3.bf16.msra.mxu1 %v823_v16 }
 0x17d   :  { %825 = vmatprep.subr.bf16.mxu1 %v972_v23 }
 0x180   :  { %827 = vmatpush3.bf16.msra.mxu1 %v826_v19 }
 0x181   :  { %828 = vmatprep.subr.bf16.mxu1 %v972_v23 }
 0x184   :  { %830 = vmatpush3.bf16.msra.mxu1 %v829_v22 }
 0x187   :  { %685 = vmatmul.mubr.f32.vlgmr.msra.gmra.mrb[2].mxu1 %v389_v1 }
 0x25a   :  { %v561_v24 = vpop.f32.mrb[2].mxu1 }
 0x25b   :  { %565 = vst [vmem:[#allocation10] sm:$0xf] %v561_v24  ;;  %v686_v25 = vpop.f32.mrb[3].mxu1 }
 0x25c   :  { %944 = shalt.err (!%p941_p8)
}
 0x25d   :  { %s945_s15 = scalar_lea.hbm %s1087_s4, 64 }
 0x25e   :  { %p946_p9 = scmp.ne.s32.totalorder %s1087_s4, %s945_s15  ;;  %p949_p10 = scmp.lt.u32.totalorder %s945_s15, %s1087_s4 }
 0x260   :  { %p951_p11 = pnand %p949_p10, %p946_p9 }
 0x262   :  { %954 = shalt.err (!%p951_p11)
}
 0x263   :  { %575 = dma.vmem_to_hbm [thread:$0]  %s573_s12, 64, %s1087_s4, [#allocation4]  }
 0x264   :  { %961 = dma.done.wait [#allocation4], 64  }
 0x265   :  { %962 = vsyncadd [#allocation4], 4294967232 }
 0x266   :  { %579 = vsyncpa [#allocation3], 1 }
 0x267   :  { %580 = vsyncpa [#allocation6], 1 }
 0x268   :  { %581 = vsyncpa [#allocation9], 1 }
 0x269   :  { %582 = vsyncpa [#allocation4], 1 }

</bundles_post_ra>
